<compile_context>
chip_gen: v7x
topology: tpu7x:2x2x1
jax: 0.10.0
libtpu: 0.0.40
codegen_flags: <defaults>
</compile_context>

<pallas_src>
import numpy as np
import jax
import jax.numpy as jnp
from jax import lax
from jax.experimental import pallas as pl
from jax.experimental.pallas import tpu as pltpu


def _round_up(x, m):
    return (x + m - 1) // m * m


def conv_bn_relu_kernel(w_ref, p_ref, shift_ref, o_ref):
    # w_ref:     (TM, CKp)      conv weights with BN scale folded in
    # p_ref:     (1, CKp, TN)   im2col patches for this (batch, column-tile)
    # shift_ref: (TM, 1)        beta - running_mean * scale
    # o_ref:     (1, TM, TN)
    y = jnp.dot(w_ref[...], p_ref[0], preferred_element_type=jnp.float32)  # MXU, f32 accum
    y = y + shift_ref[...]                                                 # BN shift
    o_ref[0] = jnp.maximum(y, 0.0).astype(o_ref.dtype)                     # ReLU (MaxPool1d(1) = id)


def basic_conv1d_forward(x, weight, gamma, beta, running_mean, running_var,
                         *, stride=1, padding=0, dilation=1, eps=1e-5):
    """x: (B, C_in, L). weight: (C_out, C_in, K). Returns (B, C_out, L_out)."""
    B, C_in, L = x.shape
    C_out, _, K = weight.shape
    L_out = (L + 2 * padding - dilation * (K - 1) - 1) // stride + 1
    CK = C_in * K

    # ---- tile sizes (TM multiple of 8, TN multiple of 128, capped for v7x VMEM) ----
    TM = min(128, _round_up(C_out, 8))
    TN = min(512, _round_up(L_out, 128))
    C_out_p = _round_up(C_out, TM)
    L_out_p = _round_up(L_out, TN)
    CK_p = _round_up(CK, 8)

    # ---- glue: pad + im2col in batched layout (B, C_in*K, L_out); no HBM transposes ----
    x_pad = jnp.pad(x, ((0, 0), (0, 0), (padding, padding)))
    taps = []
    for k in range(K):
        start = k * dilation
        stop = start + (L_out - 1) * stride + 1
        taps.append(x_pad[:, :, start:stop:stride])            # (B, C_in, L_out)
    patches = jnp.stack(taps, axis=2).reshape(B, CK, L_out)    # contiguous reshape only
    patches = jnp.pad(patches, ((0, 0), (0, CK_p - CK), (0, L_out_p - L_out)))
    # TODO(synk): for K>1 this im2col still duplicates input rows K times in HBM; an
    # in-kernel halo/tap extraction via manual DMA would cut streamed traffic further.

    # ---- fold eval-mode BatchNorm: scale into weights, shift stays as per-channel add ----
    scale = gamma / jnp.sqrt(running_var + eps)                # (C_out,)
    w2d = weight.reshape(C_out, CK) * scale[:, None]           # (C_out, CK)
    shift = (beta - running_mean * scale)[:, None]             # (C_out, 1)
    w2d = jnp.pad(w2d, ((0, C_out_p - C_out), (0, CK_p - CK)))
    shift = jnp.pad(shift, ((0, C_out_p - C_out), (0, 0)))

    grid = (B, C_out_p // TM, L_out_p // TN)

    itemsize = jnp.dtype(x.dtype).itemsize
    flops = 2 * B * C_out_p * CK_p * L_out_p
    bytes_accessed = itemsize * (w2d.size + patches.size + shift.size
                                 + B * C_out_p * L_out_p)

    out = pl.pallas_call(
        conv_bn_relu_kernel,
        out_shape=jax.ShapeDtypeStruct((B, C_out_p, L_out_p), x.dtype),
        grid=grid,
        in_specs=[
            pl.BlockSpec((TM, CK_p), lambda b, i, j: (i, 0)),        # weights: resident per row-tile
            pl.BlockSpec((1, CK_p, TN), lambda b, i, j: (b, 0, j)),  # patches: streamed
            pl.BlockSpec((TM, 1), lambda b, i, j: (i, 0)),           # shift: resident per row-tile
        ],
        out_specs=pl.BlockSpec((1, TM, TN), lambda b, i, j: (b, i, j)),
        compiler_params=pltpu.CompilerParams(
            dimension_semantics=("parallel", "parallel", "parallel")),
        cost_estimate=pl.CostEstimate(
            flops=flops, transcendentals=0, bytes_accessed=bytes_accessed),
    )(w2d, patches, shift)

    # slice off padding; MaxPool1d(kernel_size=1, stride=1) is identity -> no op.
    return out[:, :C_out, :L_out]


def _reference(x, weight, gamma, beta, running_mean, running_var,
               *, stride, padding, dilation, eps=1e-5):
    y = lax.conv_general_dilated(
        x, weight,
        window_strides=(stride,),
        padding=[(padding, padding)],
        rhs_dilation=(dilation,),
        dimension_numbers=("NCH", "OIH", "NCH"))
    scale = (gamma / jnp.sqrt(running_var + eps))[None, :, None]
    shift = (beta - running_mean * gamma / jnp.sqrt(running_var + eps))[None, :, None]
    return jnp.maximum(y * scale + shift, 0.0)


if __name__ == "__main__":
    # small shapes consistent with the module: batch=2, C_in=4, C_out=8, L=16, K=3
    B, C_in, C_out, L, K = 2, 4, 8, 16, 3
    stride, padding, dilation = 1, 1, 1

    key = jax.random.PRNGKey(0)
    kx, kw, kg, kb, km, kv = jax.random.split(key, 6)
    x = jax.random.normal(kx, (B, C_in, L), dtype=jnp.float32)
    weight = jax.random.normal(kw, (C_out, C_in, K), dtype=jnp.float32) * 0.1
    gamma = jax.random.normal(kg, (C_out,), dtype=jnp.float32) * 0.1 + 1.0
    beta = jax.random.normal(kb, (C_out,), dtype=jnp.float32) * 0.1
    running_mean = jax.random.normal(km, (C_out,), dtype=jnp.float32) * 0.1
    running_var = jnp.abs(jax.random.normal(kv, (C_out,), dtype=jnp.float32)) * 0.1 + 1.0

    out = basic_conv1d_forward(
        x, weight, gamma, beta, running_mean, running_var,
        stride=stride, padding=padding, dilation=dilation)
    out = jax.block_until_ready(out)

    ref = _reference(x, weight, gamma, beta, running_mean, running_var,
                     stride=stride, padding=padding, dilation=dilation)
    np.testing.assert_allclose(np.asarray(out), np.asarray(ref), rtol=1e-5, atol=1e-5)

    print("KERNEL_OK")
</pallas_src>

<mosaic_0001>
module attributes {stable_mosaic.version = 11 : i64} {
  func.func @conv_bn_relu_kernel(%arg0: i32, %arg1: i32, %arg2: i32, %arg3: memref<8x16xf32, #tpu.memory_space<vmem>>, %arg4: memref<1x16x128xf32, #tpu.memory_space<vmem>>, %arg5: memref<8x1xf32, #tpu.memory_space<vmem>>, %arg6: memref<1x8x128xf32, #tpu.memory_space<vmem>>) attributes {dimension_semantics = [#tpu.dimension_semantics<parallel>, #tpu.dimension_semantics<parallel>, #tpu.dimension_semantics<parallel>], iteration_bounds = array<i64: 2, 1, 1>, scalar_prefetch = 0 : i64, scratch_operands = 0 : i64, tpu.core_type = #tpu.core_type<tc>, window_params = [{transform_indices = @transform_0, window_bounds = array<i64: 8, 16>}, {transform_indices = @transform_1, window_bounds = array<i64: 1, 16, 128>}, {transform_indices = @transform_2, window_bounds = array<i64: 8, 1>}, {transform_indices = @transform_3, window_bounds = array<i64: 1, 8, 128>}]} {
    %c0 = arith.constant 0 : index
    %c0_0 = arith.constant 0 : index
    %0 = vector.load %arg3[%c0, %c0_0] : memref<8x16xf32, #tpu.memory_space<vmem>>, vector<8x16xf32>
    %c0_1 = arith.constant 0 : index
    %c0_2 = arith.constant 0 : index
    %c0_3 = arith.constant 0 : index
    %1 = vector.load %arg4[%c0_1, %c0_2, %c0_3] : memref<1x16x128xf32, #tpu.memory_space<vmem>>, vector<1x16x128xf32>
    %2 = vector.shape_cast %1 : vector<1x16x128xf32> to vector<16x128xf32>
    %cst = arith.constant dense<0.000000e+00> : vector<8x128xf32>
    %3 = tpu.matmul %0, %2, %cst {dimension_numbers = #tpu.dot_dimension_numbers<[1], [0], [0], [1], [0, 0, 1, 1], [], []>} : vector<8x16xf32>, vector<16x128xf32>, vector<8x128xf32> -> vector<8x128xf32>
    %c0_4 = arith.constant 0 : index
    %c0_5 = arith.constant 0 : index
    %4 = vector.load %arg5[%c0_4, %c0_5] : memref<8x1xf32, #tpu.memory_space<vmem>>, vector<8x1xf32>
    %5 = vector.broadcast %4 : vector<8x1xf32> to vector<8x128xf32>
    %6 = arith.addf %3, %5 : vector<8x128xf32>
    %cst_6 = arith.constant 0.000000e+00 : f32
    %7 = vector.broadcast %cst_6 : f32 to vector<8x128xf32>
    %8 = arith.maximumf %6, %7 : vector<8x128xf32>
    %c0_7 = arith.constant 0 : index
    %c0_8 = arith.constant 0 : index
    %c0_9 = arith.constant 0 : index
    %9 = vector.load %arg6[%c0_7, %c0_8, %c0_9] : memref<1x8x128xf32, #tpu.memory_space<vmem>>, vector<1x8x128xf32>
    %10 = vector.shape_cast %9 : vector<1x8x128xf32> to vector<8x128xf32>
    %11 = vector.shape_cast %8 : vector<8x128xf32> to vector<1x8x128xf32>
    tpu.vector_store %arg6[%c0_7, %c0_8, %c0_9], %11 {strides = array<i32>} : memref<1x8x128xf32, #tpu.memory_space<vmem>>, vector<1x8x128xf32>,
    return
  }
  func.func @transform_0(%arg0: i32, %arg1: i32, %arg2: i32) -> (i32, i32) {
    %c0_i32 = arith.constant 0 : i32
    %c0_i32_0 = arith.constant 0 : i32
    return %arg1, %c0_i32 : i32, i32
  }
  func.func @transform_1(%arg0: i32, %arg1: i32, %arg2: i32) -> (i32, i32, i32) {
    %c0_i32 = arith.constant 0 : i32
    %c0_i32_0 = arith.constant 0 : i32
    return %arg0, %c0_i32, %arg2 : i32, i32, i32
  }
  func.func @transform_2(%arg0: i32, %arg1: i32, %arg2: i32) -> (i32, i32) {
    %c0_i32 = arith.constant 0 : i32
    %c0_i32_0 = arith.constant 0 : i32
    return %arg1, %c0_i32 : i32, i32
  }
  func.func @transform_3(%arg0: i32, %arg1: i32, %arg2: i32) -> (i32, i32, i32) {
    %c0_i32 = arith.constant 0 : i32
    return %arg0, %arg1, %arg2 : i32, i32, i32
  }
}

</mosaic_0001>

<bundles_post_ra>
// kernel: tpu_custom_call.1
= control target key start
LH: loop header
LB: loop body
LE: loop exit
PB: predicated region body
PF: predicated region fallthrough
CT: control target
= control target key end

     0   :  { %8 = vsyncpa [#allocation3], 0  ;;  %s887_s0 = inlined_call_operand.vmem [shape: f32[8,16], index: 0, kind: input, shape index: {}]   ;;  %s888_s1 = inlined_call_operand.hbm [shape: f32[2,16,128], index: 1, kind: input, shape index: {}]   ;;  %s889_s2 = inlined_call_operand.vmem [shape: f32[8,1], index: 2, kind: input, shape index: {}]   ;;  %s890_s3 = inlined_call_operand.hbm [shape: f32[2,8,128], index: 3, kind: output, shape index: {}]  }
   0x1   :  { %10 = vsyncpa [#allocation3 + $0x1], 0 }
   0x2   :  { %11 = vsyncpa [#allocation4], 0 }
   0x3   :  { %13 = vsyncpa [#allocation4 + $0x1], 0  ;;  %s707_s12 = smov 0   ;;  %s709_s13 = smov 0  }
   0x4   :  { %s711_s14 = smov 0   ;;  %s713_s15 = smov 0  }
   0x5   :  { %s715_s16 = smov 0   ;;  %s717_s17 = smov 0  }
   0x6 LB: > { %s465_s18 = sadd.s32 4294967295, %s677_s17   ;;  %s466_s19 = sadd.s32 4294967294, %s677_s17   ;;  %s677_s17 = sphi %s717_s17, %s19_s17   ;;  %s673_s16 = sphi %s715_s16, %s905_s16   ;;  %s669_s15 = sphi %s713_s15, %s904_s15   ;;  %s665_s14 = sphi %s711_s14, %s903_s14   ;;  %s661_s13 = sphi %s709_s13, %s902_s13   ;;  %s657_s12 = sphi %s707_s12, %s901_s12  }
   0x7   : > { %s38_s20 = sadd.s32 1, %s673_s16  ;;  %s73_s21 = sadd.s32 1, %s665_s14 }
   0x8   : > { %p40_p0 = scmp.ge.s32.totalorder %s38_s20, 2  ;;  %p80_p1 = scmp.ne.s32.totalorder %s665_s14, %s661_s13 }
   0x9   : > { %p81_p2 = scmp.eq.s32.totalorder %s677_s17, 0  ;;  %p86_p3 = scmp.ne.s32.totalorder %s661_s13, %s657_s12 }
   0xa   : > { %s907_s20 = smov (%p40_p0, %s38_s20), 0  ;;  %p87_p5 = scmp.eq.s32.totalorder %s465_s18, 0 }
   0xb   : > { %p748_p4 = por %p81_p2, %p80_p1  ;;  %s68_s23 = ssub.s32 %s673_s16, %s907_s20 }
   0xc   : > { %p140_p6 = scmp.eq.s32.totalorder %s465_s18, 1  ;;  %p71_p7 = scmp.eq.s32.totalorder %s68_s23, 0 }
   0xd   : > { %p754_p8 = por %p87_p5, %p86_p3  ;;  %p146_p10 = scmp.eq.s32.totalorder %s466_s19, 1 }
   0xe   : > { %p758_p9 = por %p140_p6, %p80_p1  ;;  %p508_p13 = scmp.lt.s32.totalorder %s677_s17, 2 }
   0xf   : > { %s763_s26 = scalar_select %p71_p7, %s665_s14, %s73_s21  }
  0x10   : > { %s894_s25 = scalar_select %p758_p9, 1, 0 }
  0x11   : > { %p765_p11 = por %p146_p10, %p86_p3  ;;  %s180_s28 = sand.u32 1, %s665_s14  }
  0x12   : > { %s471_s29 = sshll.u32 %s180_s28, 4  ;;  %s482_s30 = sshll.u32 %s673_s16, 8 }
  0x13   : > { %s895_s27 = scalar_select %p765_p11, 1, 0 }
  0x14   : > { %s776_s6 = scalar_lea.hbm %s888_s1, %s482_s30  ;;  %s184_s7 = scalar_lea.vmem [#allocation2], %s471_s29 }
  0x15   : > { %s192_s8 = sshll.u32 %s184_s7, 4  ;;  %p782_p0 = pnand %p508_p13, %p748_p4  ;;  %s778_s8 = int_to_ptr.vmem [resolvable:$true] %s192_s8 }
  0x16   : > { %s787_s10 = scalar_lea.sflag [#allocation3], %s180_s28  ;;  %s565_s11 = scalar_lea.hbm %s776_s6, 256 }
  0x17   : > { %p566_p2 = scmp.ne.s32.totalorder %s776_s6, %s565_s11  ;;  %p567_p3 = pneg %p782_p0 }
  0x18   : > { %s570_s21 = scalar_lea.hbm %s888_s1, 512  ;;  %p571_p4 = scmp.lt.u32.totalorder %s776_s6, %s888_s1 }
  0x19   : > { %p568_p5 = pnand %p567_p3, %p566_p2  ;;  %p572_p7 = scmp.lt.u32.totalorder %s570_s21, %s565_s11 }
  0x1a   : > { %p574_p13 = scmp.lt.u32.totalorder %s565_s11, %s776_s6 }
  0x1b   : > { %p569_p6 = pneg %p568_p5  ;;  %p573_p10 = por %p572_p7, %p571_p4 }
  0x1d   : > { %p575_p12 = por %p574_p13, %p573_p10 }
  0x1f   : > { %p576_p1 = pnand %p575_p12, %p569_p6 }
  0x21   : > { %579 = shalt.err (!%p576_p1)
}
  0x22   : > { %s580_s28 = scalar_lea.vmem %s778_s8, 256  ;;  %s679_s29 = smov [#allocation2]  }
  0x23   : > { %p581_p2 = scmp.ne.s32.totalorder %s778_s8, %s580_s28  ;;  %s585_s30 = sshll.u32 %s679_s29, 4  ;;  %s586_s30 = int_to_ptr.vmem [resolvable:$false] %s585_s30 }
  0x24   : > { %s587_s4 = scalar_lea.vmem %s586_s30, 512  ;;  %p588_p9 = scmp.lt.s32.totalorder %s778_s8, %s586_s30 }
  0x25   : > { %p583_p5 = pnand %p581_p2, %p567_p3  ;;  %p589_p4 = scmp.lt.s32.totalorder %s587_s4, %s580_s28 }
  0x27   : > { %p584_p11 = pneg %p583_p5  ;;  %p590_p7 = por %p589_p4, %p588_p9 }
  0x29   : > { %p591_p10 = pnand %p590_p7, %p584_p11 }
  0x2b   : > { %594 = shalt.err (!%p591_p10)
}
  0x2c   : > { %s680_s5 = smov 128   ;;  %s681_s7 = smov 8  }
  0x2d   : > { %503 = dma.hbm_to_vmem [thread:$0]  (!%p782_p0), %s776_s6, 256, %s778_s8, %s787_s10, %s680_s5, %s680_s5, %s681_s7  }
  0x2e   : > { %p200_p12 = scmp.lt.s32.totalorder %s677_s17, 3  ;;  %p897_p1 = scmp.ge.s32.totalorder %s677_s17, 1 }
  0x30   : > { %p201_p3 = pnand %p897_p1, %p200_p12 }
  0x31   : > { %s819_s11 = sand.u32 (!%p201_p3), 1, %s661_s13  }
  0x32   : > { %204 = sbr.rel (%p201_p3) target bundleno = 295 (0x127), region = 32  ;;  %s475_s18 = sshll.u32 (!%p201_p3), %s819_s11, 4 }
  0x33   : > { %s207_s19 = scalar_lea.sflag (!%p201_p3), [#allocation3], %s819_s11  ;;  %s210_s21 = scalar_lea.vmem (!%p201_p3), [#allocation2], %s475_s18 }
  0x39   : > { %648 = dma.done.wait (%p754_p8), %s207_s19, 256  }
  0x3a   : > { %650 = vsyncadd (%p754_p8), %s207_s19, 4294967040  ;;  %v682_v0 = vmov 0.0|0.0   ;;  %vm683_vm0 = vmmov 0   ;;  %v684_v1 = vmov 0.0   ;;  %v685_v2 = vmov 0   ;;  %v250_v3 = vld [vmem:[%s210_s21] sm:$0xff] }
  0x3b   : > { %493 = vmatprep.subr.bf16.mxu0 %v682_v0  ;;  %490 = vmatprep.mubr.msk.f32.mxu0 %vm683_vm0, %v684_v1  ;;  %v251_v4 = vld [vmem:[%s210_s21 + $0x8] sm:$0xff]  ;;  %v252_v6 = vld [vmem:[%s889_s2] sm:$0xff]  ;;  %vm258_vm1 = vcmask 130048   ;;  %s476_s10 = sshll.u32 %s819_s11, 3  ;;  %s479_s22 = sshll.u32 %s669_s15, 7 }
  0x3c   : > { %564 = vset.pattern.permute.xlu0 %v685_v2  ;;  %v494_v5 = vpack.c.bf16 %v251_v4, %v250_v3  ;;  %v249_v7 = vld [vmem:[%s887_s0] sm:$0xff]  ;;  %s240_s23 = scalar_lea.vmem [#allocation5], %s476_s10  ;;  %s838_s4 = scalar_lea.hbm %s890_s3, %s479_s22 }
  0x3d   : > { %255 = vperm.xlu0 %564, %v252_v6   ;;  %s350_s28 = sshll.u32 %s240_s23, 4  ;;  %s335_s5 = scalar_lea.sflag [#allocation4], %s819_s11  ;;  %s840_s28 = int_to_ptr.vmem [resolvable:$true] %s350_s28 }
  0x3e   : > { %495 = vmatpush3.bf16.msra.mxu0 %v494_v5  ;;  %s595_s7 = scalar_lea.vmem %s840_s28, 128  ;;  %p898_p9 = scmp.ne.s32.totalorder %s894_s25, 0 }
  0x3f   : > { %p596_p8 = scmp.ne.s32.totalorder %s840_s28, %s595_s7  ;;  %s686_s15 = smov [#allocation5]  }
  0x40   : > { %s599_s18 = sshll.u32 %s686_s15, 4  ;;  %s600_s18 = int_to_ptr.vmem [resolvable:$false] %s599_s18 }
  0x41   : > { %491 = vmatmul.mubr.msk.f32.vlgmr.msra.gmra.mrb[0].mxu0 %vm258_vm1, %v249_v7  ;;  %p597_p11 = pnand %p596_p8, %p898_p9  ;;  %s601_s19 = scalar_lea.vmem %s600_s18, 256 }
  0x42   : > { %p602_p6 = scmp.lt.s32.totalorder %s840_s28, %s600_s18  ;;  %p603_p13 = scmp.lt.s32.totalorder %s601_s19, %s595_s7 }
  0x43   : > { %p598_p0 = pneg %p597_p11 }
  0x44   : > { %p604_p2 = por %p603_p13, %p602_p6 }
  0x46   : > { %p605_p5 = pnand %p604_p2, %p598_p0 }
  0xbc   : > { %v256_v8 = vpop.permute.xlu0 %255 }
 0x114   : > { %v328_v9 = vpop.f32.mrb[0].mxu0 }
 0x115   : > { %v329_v10 = vadd.f32 %v328_v9, %v256_v8  ;;  %v492_v11 = vpop.f32.mrb[1].mxu0 }
 0x117   : > { %v332_v12 = vmax.f32 %v329_v10, 0.0 }
 0x119   : > { %333 = vst [vmem:[%s240_s23] sm:$0xff] %v332_v12 }
 0x11a   : > { %608 = shalt.err (!%p605_p5)
}
 0x11b   : > { %s609_s11 = scalar_lea.hbm %s838_s4, 128  ;;  %s613_s8 = scalar_lea.hbm %s890_s3, 256 }
 0x11c   : > { %p610_p4 = scmp.ne.s32.totalorder %s838_s4, %s609_s11  ;;  %p614_p12 = scmp.lt.u32.totalorder %s838_s4, %s890_s3 }
 0x11d   : > { %p615_p1 = scmp.lt.u32.totalorder %s613_s8, %s609_s11  ;;  %p617_p8 = scmp.lt.u32.totalorder %s609_s11, %s838_s4 }
 0x11e   : > { %p611_p7 = pnand %p610_p4, %p898_p9 }
 0x11f   : > { %p616_p3 = por %p615_p1, %p614_p12 }
 0x120   : > { %p612_p10 = pneg %p611_p7 }
 0x121   : > { %p618_p11 = por %p617_p8, %p616_p3 }
 0x123   : > { %p619_p0 = pnand %p618_p11, %p612_p10 }
 0x125   : > { %622 = shalt.err (!%p619_p0)
}
 0x126   : > { %498 = dma.vmem_to_hbm [thread:$0]  (%p898_p9), %s840_s28, 128, %s838_s4, %s335_s5  }
 0x127 PF: > { %s362_s10 = sand.u32 1, %s657_s12   ;;  %p899_p6 = scmp.ne.s32.totalorder %s895_s27, 0 }
 0x128   : > { %p900_p13 = scmp.ge.s32.totalorder %s677_s17, 2  ;;  %s363_s22 = scalar_lea.sflag [#allocation4], %s362_s10 }
 0x12a   : > { %p505_p2 = pnand %p900_p13, %p899_p6 }
 0x12c   : > { %652 = dma.done.wait (!%p505_p2), %s363_s22, 128  }
 0x12d   : > { %654 = vsyncadd (!%p505_p2), %s363_s22, 4294967168  ;;  %s19_s17 = sadd.s32 1, %s677_s17   ;;  %s901_s12 = smov %s661_s13 }
 0x12e   : > { %p16_p5 = scmp.ge.s32.totalorder %s19_s17, 4   ;;  %s902_s13 = smov %s665_s14 }
 0x12f   : > { %s903_s14 = smov %s763_s26  ;;  %s904_s15 = smov %s673_s16 }
 0x130   : > { %s905_s16 = smov %s907_s20  ;;  %18 = sbr.rel (!%p16_p5) target bundleno = 6 (0x6), region = 83 }
 0x137   :  { %368 = vsyncpa [#allocation3], 1 }
 0x138   :  { %370 = vsyncpa [#allocation3 + $0x1], 1 }
 0x139   :  { %371 = vsyncpa [#allocation4], 1 }
 0x13a   :  { %373 = vsyncpa [#allocation4 + $0x1], 1 }

</bundles_post_ra>
